<compile_context>
chip_gen: v6e
topology: v6e:2x2x1
jax: 0.10.0
libtpu: 0.0.40
codegen_flags: <defaults>
</compile_context>

<pallas_src>
import math

import jax
import jax.numpy as jnp
from jax.experimental import pallas as pl
from jax.experimental.pallas import tpu as pltpu


def _pe_add_kernel(x_ref, pe_ref, o_ref):
    # x_ref / o_ref: (tb, ts, td) activation tile; pe_ref: (ts, td) float32 table tile.
    x = x_ref[...].astype(jnp.float32)
    o_ref[...] = (x + pe_ref[...][None, :, :]).astype(o_ref.dtype)


def _sublane_align(dtype):
    # Sub-32-bit dtypes pack along sublanes; a fully packed vreg needs 8/16/32 rows.
    return {4: 8, 2: 16, 1: 32}.get(jnp.dtype(dtype).itemsize, 8)


def _pick_tile(total, cap, align):
    """Aligned tile <= cap; full extent only when it already fits (always legal)."""
    if total <= max(cap, align):
        return total
    return max(align, (cap // align) * align)


def build_pe_table(max_len, d_model, dtype=jnp.float32):
    """Same buffer as the PyTorch __init__ (even d_model, as in the reference)."""
    assert d_model % 2 == 0, "PE table assumes even d_model (same as the reference)"
    position = jnp.arange(max_len, dtype=jnp.float32)[:, None]            # (L, 1)
    div_term = jnp.exp(jnp.arange(0, d_model, 2, dtype=jnp.float32)
                       * (-(math.log(10000.0) / d_model)))                # (D/2,)
    angles = position * div_term                                          # (L, D/2)
    pe = jnp.zeros((max_len, d_model), dtype=jnp.float32)
    pe = pe.at[:, 0::2].set(jnp.sin(angles))
    pe = pe.at[:, 1::2].set(jnp.cos(angles))
    return pe.astype(dtype)


def positional_encoding(x, pe, *, lane_cap=2048, tile_bytes_target=None, donate_x=True):
    """x: (B, S, D); pe: (max_len, D) constant float table.

    Returns x + pe[:S] broadcast over batch (eval-mode dropout = identity)."""
    b, s, d = x.shape
    assert pe.shape[0] >= s and pe.shape[1] == d

    pe_s = pe[:s].astype(jnp.float32)          # (S, D) slice so a full-extent seq block is legal

    itemsize = jnp.dtype(x.dtype).itemsize
    align_s = _sublane_align(x.dtype)

    # Generation-aware VMEM capacity (64 MiB on v7x, 128 MiB on v5e/v6e).
    try:
        vmem_cap = int(pltpu.get_tpu_info().vmem_capacity_bytes)
    except Exception:
        vmem_cap = 64 << 20                    # conservative (v7x) default

    if tile_bytes_target is None:
        # ~4-8 MiB per x tile; 2x(in)+2x(out) double buffers stay well under VMEM.
        tile_bytes_target = min(8 << 20, vmem_cap // 12)

    # Lane tile: full d_model when small, else a multiple of 128 (lane-dense stores).
    td = _pick_tile(d, lane_cap, 128)
    # Sublane tile: sequence rows (independent of batch size), dtype-aligned.
    rows_target = max(1, tile_bytes_target // (td * itemsize))
    ts = _pick_tile(s, rows_target, align_s)
    # If the whole (S, td) slab is below the byte target, stack batches in the tile.
    if ts == s:
        tb = max(1, min(b, tile_bytes_target // max(1, s * td * itemsize)))
    else:
        tb = 1

    # Megacore: make sure there are >=2 grid steps when there is enough data to matter.
    if pl.cdiv(s, ts) * pl.cdiv(d, td) * pl.cdiv(b, tb) == 1 and x.size * itemsize > (2 << 20):
        if s >= 2 * align_s:
            ts = max(align_s, ((ts // 2) // align_s) * align_s)
        elif b >= 2:
            tb = max(1, tb // 2)

    grid = (pl.cdiv(s, ts), pl.cdiv(d, td), pl.cdiv(b, tb))   # batch innermost -> pe DMA elided

    # Scoped VMEM: double-buffered x-in + out tiles, double-buffered pe tile, headroom.
    x_tile = tb * ts * td * itemsize
    pe_tile = ts * td * 4
    needed = 4 * x_tile + 2 * pe_tile + (4 << 20)
    vmem_limit = int(min(max(needed, 32 << 20), int(vmem_cap * 0.8)))

    kwargs = {}
    if donate_x:
        kwargs["input_output_aliases"] = {0: 0}     # add is done in place on x's buffer

    return pl.pallas_call(
        _pe_add_kernel,
        out_shape=jax.ShapeDtypeStruct((b, s, d), x.dtype),
        grid_spec=pltpu.PrefetchScalarGridSpec(
            num_scalar_prefetch=0,
            grid=grid,
            in_specs=[
                pl.BlockSpec((tb, ts, td), lambda i, j, bb: (bb, i, j)),  # x tile
                pl.BlockSpec((ts, td), lambda i, j, bb: (i, j)),          # pe tile (batch-invariant)
            ],
            out_specs=pl.BlockSpec((tb, ts, td), lambda i, j, bb: (bb, i, j)),
        ),
        compiler_params=pltpu.CompilerParams(
            dimension_semantics=("parallel", "parallel", "arbitrary"),
            vmem_limit_bytes=vmem_limit),
        **kwargs,
    )(x, pe_s)


def reference(x, pe):
    """Pure-JAX reference mirroring the PyTorch module in eval mode."""
    return x + pe[None, :x.shape[1], :].astype(x.dtype)


if __name__ == "__main__":
    batch, seq, d_model = 2, 8, 32
    max_len = 5000                      # PyTorch default
    # dropout p = 0.1 in the module; eval mode -> identity (see TODO above).

    key = jax.random.PRNGKey(0)
    x = jax.random.normal(key, (batch, seq, d_model), dtype=jnp.float32)

    pe = build_pe_table(max_len, d_model)

    # Compute the reference before the kernel call (x's buffer may be donated).
    ref = reference(x, pe)

    out = positional_encoding(x, pe)
    jax.block_until_ready(out)

    assert out.shape == ref.shape
    assert jnp.allclose(out, ref, atol=1e-6, rtol=1e-6), "mismatch vs reference"

    print("KERNEL_OK")
</pallas_src>

<mosaic_0001>
module attributes {stable_mosaic.version = 11 : i64} {
  func.func @_pe_add_kernel(%arg0: i32, %arg1: i32, %arg2: i32, %arg3: memref<2x8x32xf32, #tpu.memory_space<vmem>>, %arg4: memref<8x32xf32, #tpu.memory_space<vmem>>, %arg5: memref<2x8x32xf32, #tpu.memory_space<vmem>>) attributes {dimension_semantics = [#tpu.dimension_semantics<parallel>, #tpu.dimension_semantics<parallel>, #tpu.dimension_semantics<arbitrary>], iteration_bounds = array<i64: 1, 1, 1>, scalar_prefetch = 0 : i64, scratch_operands = 0 : i64, tpu.core_type = #tpu.core_type<tc>, window_params = [{transform_indices = @transform_0, window_bounds = array<i64: 2, 8, 32>}, {transform_indices = @transform_1, window_bounds = array<i64: 8, 32>}, {transform_indices = @transform_2, window_bounds = array<i64: 2, 8, 32>}]} {
    %c0 = arith.constant 0 : index
    %c0_0 = arith.constant 0 : index
    %c0_1 = arith.constant 0 : index
    %0 = vector.load %arg3[%c0, %c0_0, %c0_1] : memref<2x8x32xf32, #tpu.memory_space<vmem>>, vector<2x8x32xf32>
    %c0_2 = arith.constant 0 : index
    %c0_3 = arith.constant 0 : index
    %1 = vector.load %arg4[%c0_2, %c0_3] : memref<8x32xf32, #tpu.memory_space<vmem>>, vector<8x32xf32>
    %2 = vector.shape_cast %1 : vector<8x32xf32> to vector<1x8x32xf32>
    %3 = vector.broadcast %2 : vector<1x8x32xf32> to vector<2x8x32xf32>
    %4 = arith.addf %0, %3 : vector<2x8x32xf32>
    %c0_4 = arith.constant 0 : index
    %c0_5 = arith.constant 0 : index
    %c0_6 = arith.constant 0 : index
    %5 = vector.load %arg5[%c0_4, %c0_5, %c0_6] : memref<2x8x32xf32, #tpu.memory_space<vmem>>, vector<2x8x32xf32>
    tpu.vector_store %arg5[%c0_4, %c0_5, %c0_6], %4 {strides = array<i32>} : memref<2x8x32xf32, #tpu.memory_space<vmem>>, vector<2x8x32xf32>,
    return
  }
  func.func @transform_0(%arg0: i32, %arg1: i32, %arg2: i32) -> (i32, i32, i32) {
    %c0_i32 = arith.constant 0 : i32
    return %arg2, %arg0, %arg1 : i32, i32, i32
  }
  func.func @transform_1(%arg0: i32, %arg1: i32, %arg2: i32) -> (i32, i32) {
    %c0_i32 = arith.constant 0 : i32
    return %arg0, %arg1 : i32, i32
  }
  func.func @transform_2(%arg0: i32, %arg1: i32, %arg2: i32) -> (i32, i32, i32) {
    %c0_i32 = arith.constant 0 : i32
    return %arg2, %arg0, %arg1 : i32, i32, i32
  }
}

</mosaic_0001>

<bundles_post_ra>
// kernel: tpu_custom_call.1
= control target key start
LH: loop header
LB: loop body
LE: loop exit
PB: predicated region body
PF: predicated region fallthrough
CT: control target
= control target key end

     0   :  { %7 = vsyncpa [#allocation3], 0  ;;  %s127_s0 = inlined_call_operand.hbm [shape: f32[2,8,32], index: 0, kind: input, shape index: {}, may-alias: {0,2}]   ;;  %s128_s1 = inlined_call_operand.vmem [shape: f32[8,32], index: 1, kind: input, shape index: {}]   ;;  %s129_s2 = inlined_call_operand.hbm [shape: f32[2,8,32], index: 2, kind: output, shape index: {}, may-alias: {0,2}]  }
   0x1   :  { %8 = vsyncpa [#allocation4], 0  ;;  %s99_s9 = smov [#allocation2]  }
   0x2   :  { %s14_s10 = sshll.u32 %s99_s9, 4  ;;  %s15_s10 = int_to_ptr.vmem [resolvable:$true] %s14_s10 }
   0x3   :  { %s63_s11 = scalar_lea.vmem %s15_s10, 256  ;;  %p68_p1 = scmp.lt.s32.totalorder %s15_s10, %s15_s10 }
   0x4   :  { %p64_p0 = scmp.ne.s32.totalorder %s15_s10, %s63_s11  ;;  %p69_p2 = scmp.lt.s32.totalorder %s63_s11, %s63_s11 }
   0x6   :  { %p70_p3 = por %p69_p2, %p68_p1 }
   0x8   :  { %p71_p4 = pnand %p70_p3, %p64_p0 }
   0xa   :  { %74 = shalt.err (!%p71_p4)
}
   0xb   :  { %s100_s12 = smov 128   ;;  %s101_s13 = smov 8  }
   0xc   :  { %20 = dma.hbm_to_vmem [thread:$0]  %s127_s0, 256, %s15_s10, [#allocation3], %s100_s12, %s100_s12, %s101_s13  }
   0xd   :  { %95 = dma.done.wait [#allocation3], 256  }
   0xe   :  { %96 = vsyncadd [#allocation3], 4294967040  ;;  %s102_s16 = smov [#allocation5]   ;;  %v26_v0 = vld [vmem:[#allocation2] sm:$0xff]  ;;  %vm31_vm0 = vcmask 261120   ;;  %v27_v2 = vld [vmem:[#allocation2 + $0x8] sm:$0xff] }
   0xf   :  { %s39_s17 = sshll.u32 %s102_s16, 4  ;;  %v28_v1 = vld [vmem:[%s128_s1] sm:$0xff]  ;;  %s40_s17 = int_to_ptr.vmem [resolvable:$true] %s39_s17 }
  0x10   :  { %v29_v3 = vadd.f32 %v28_v1, %v26_v0  ;;  %v30_v4 = vadd.f32 %v28_v1, %v27_v2  ;;  %s75_s20 = scalar_lea.vmem %s40_s17, 256  ;;  %p80_p6 = scmp.lt.s32.totalorder %s40_s17, %s40_s17 }
  0x11   :  { %p76_p5 = scmp.ne.s32.totalorder %s40_s17, %s75_s20  ;;  %p81_p7 = scmp.lt.s32.totalorder %s75_s20, %s75_s20 }
  0x12   :  { %32 = vst.msk [vmem:[#allocation5] sm:$0xff] %vm31_vm0, %v29_v3  ;;  %33 = vst.msk [vmem:[#allocation5 + $0x8] sm:$0xff] %vm31_vm0, %v30_v4 }
  0x13   :  { %p82_p8 = por %p81_p7, %p80_p6 }
  0x15   :  { %p83_p9 = pnand %p82_p8, %p76_p5 }
  0x17   :  { %86 = shalt.err (!%p83_p9)
}
  0x18   :  { %45 = dma.vmem_to_hbm [thread:$0]  %s40_s17, 256, %s129_s2, [#allocation4], %s100_s12, %s100_s12, %s101_s13  }
  0x19   :  { %97 = dma.done.wait [#allocation4], 256  }
  0x1a   :  { %98 = vsyncadd [#allocation4], 4294967040 }
  0x1b   :  { %49 = vsyncpa [#allocation3], 1 }
  0x1c   :  { %50 = vsyncpa [#allocation4], 1 }

</bundles_post_ra>
